<compile_context>
chip_gen: v7x
topology: tpu7x:2x2x1
jax: 0.10.0
libtpu: 0.0.40
codegen_flags: <defaults>
</compile_context>

<pallas_src>
import functools

import jax
import jax.numpy as jnp
import numpy as np
from jax.experimental import pallas as pl
from jax.experimental.pallas import tpu as pltpu

NEG_SLOPE = 0.2
MASK_VALUE = -1e30


def _project_kernel(x_ref, w_ref, attn_ref, feat_ref, scores_ref):
    """All-heads projection + attention score vectors for one node tile.

    x_ref      : (TILE_N, Din)
    w_ref      : (Din, H*F)      full projection weight (all heads)
    attn_ref   : (H*F, 2H)       block-diag [attn_l | attn_r]
    feat_ref   : (TILE_N, H*F)   out: projected features (f32 or bf16)
    scores_ref : (TILE_N, 2H)    out: [el | er], computed from the f32 product
    """
    feat = jnp.dot(x_ref[...], w_ref[...], preferred_element_type=jnp.float32)
    scores_ref[...] = jnp.dot(feat, attn_ref[...],
                              preferred_element_type=jnp.float32)
    feat_ref[...] = feat.astype(feat_ref.dtype)


def _attention_kernel(num_heads, out_feats, logits_dtype,
                      er_ref, elt_ref, feat_ref, adj_ref, bias_ref, out_ref,
                      m_scr, l_scr, acc_scr):
    """One (dst-tile, src-chunk) step, all heads: online masked edge-softmax.

    er_ref   : (TILE_V, H)       dst attention scores for this dst tile
    elt_ref  : (H, TILE_S)       src attention scores for this src chunk
    feat_ref : (TILE_S, H*F)     projected features for this src chunk
    adj_ref  : (TILE_V, TILE_S)  int8, adj_in[v, u] = 1 iff edge u -> v
    bias_ref : (1, H*F)
    out_ref  : (TILE_V, H*F)     aggregated output (written at last chunk)
    m_scr    : (TILE_V, H) f32   running max
    l_scr    : (TILE_V, H) f32   running sum of exp
    acc_scr  : (TILE_V, H*F) f32 running (unnormalized) aggregation
    """
    j = pl.program_id(1)

    @pl.when(j == 0)
    def _init():
        m_scr[...] = jnp.full_like(m_scr, MASK_VALUE)
        l_scr[...] = jnp.zeros_like(l_scr)
        acc_scr[...] = jnp.zeros_like(acc_scr)

    # Additive mask built ONCE per (dst-tile, src-chunk), shared by all heads.
    # Direct int8 compare: no int8 -> f32 convert pass.
    neg = jnp.where(adj_ref[...] > 0,
                    jnp.zeros((), logits_dtype),
                    jnp.full((), MASK_VALUE, logits_dtype))      # (TILE_V, TILE_S)
    er = er_ref[...].astype(logits_dtype)                        # (TILE_V, H)
    elt = elt_ref[...].astype(logits_dtype)                      # (H, TILE_S)
    feat = feat_ref[...]                                         # (TILE_S, H*F)

    for h in range(num_heads):                                   # H is small: static unroll
        # Logit chain fused in vregs (no (TILE_V, N) materialization).
        e = er[:, h:h + 1] + elt[h:h + 1, :] + neg               # (TILE_V, TILE_S)
        e = jnp.maximum(e, NEG_SLOPE * e)                        # leaky_relu, slope 0.2

        # Online softmax update (running state in f32).
        m_prev = m_scr[:, h:h + 1]                               # (TILE_V, 1) f32
        m_cur = jnp.max(e, axis=-1, keepdims=True).astype(jnp.float32)
        m_new = jnp.maximum(m_prev, m_cur)
        alpha = jnp.exp(m_prev - m_new)                          # (TILE_V, 1) f32
        p = jnp.exp(e - m_new.astype(logits_dtype))              # (TILE_V, TILE_S)

        l_scr[:, h:h + 1] = alpha * l_scr[:, h:h + 1] + jnp.sum(
            p, axis=-1, keepdims=True, dtype=jnp.float32)

        f_h = feat[:, h * out_feats:(h + 1) * out_feats]         # (TILE_S, F)
        pv = jnp.dot(p.astype(feat.dtype), f_h,
                     preferred_element_type=jnp.float32)         # (TILE_V, F)
        acc_scr[:, h * out_feats:(h + 1) * out_feats] = (
            alpha * acc_scr[:, h * out_feats:(h + 1) * out_feats] + pv)
        m_scr[:, h:h + 1] = m_new

    @pl.when(j == pl.num_programs(1) - 1)
    def _finalize():
        outs = []
        for h in range(num_heads):
            denom = l_scr[:, h:h + 1]                            # exact division (epilogue only)
            outs.append(acc_scr[:, h * out_feats:(h + 1) * out_feats] / denom)
        out = jnp.concatenate(outs, axis=-1) + bias_ref[...]     # (TILE_V, H*F) lane-dense
        out_ref[...] = out.astype(out_ref.dtype)


def gat_conv_pny_forward(adj_in_i8, feat, fc_weight, attn_l, attn_r, bias,
                         *, tile_n=512, tile_v=128, tile_s=512,
                         feat_dtype=jnp.bfloat16, logits_dtype=jnp.float32):
    """GATConv_PNY.forward on a dense graph.

    adj_in_i8   : (N, N) int8, dst-major: adj_in_i8[v, u] = 1 iff edge u -> v
    feat        : (N, Din) f32
    fc_weight   : (Din, H*F) f32   (x @ fc_weight == nn.Linear(x))
    attn_l/r    : (1, H, F) f32
    bias        : (H*F,) f32
    feat_dtype  : dtype of the projected features fed to the aggregation MXU
                  (bf16 default: native MXU rate on all chips)
    logits_dtype: dtype of the per-edge logit chain (f32 default; bf16 is a
                  good choice on v6e/v7x where VPU/EUP are bf16-native)
    returns     : (N, H, F) f32

    Precondition: every node has at least one incoming edge (e.g. self-loops),
    matching the module's allow_zero_in_degree check; otherwise that row's
    output is invalid (division by zero / unmasked mean).
    """
    N, Din = feat.shape
    _, H, F = attn_l.shape
    HF = H * F
    tile_n = min(tile_n, N)
    tile_v = min(tile_v, N)
    tile_s = min(tile_s, N)
    assert N % tile_n == 0 and N % tile_v == 0 and N % tile_s == 0, \
        "N must be divisible by tile sizes"

    # Block-diagonal attention matrices: el/er come out of a single matmul.
    eye = jnp.eye(H, dtype=jnp.float32)
    al_bd = (attn_l[0][:, :, None] * eye[:, None, :]).reshape(HF, H)
    ar_bd = (attn_r[0][:, :, None] * eye[:, None, :]).reshape(HF, H)
    attn_cat = jnp.concatenate([al_bd, ar_bd], axis=1)           # (H*F, 2H)

    feat_isz = jnp.dtype(feat_dtype).itemsize

    # ---- Kernel 1: projection + score vectors, tiled over nodes ------------
    proj_cost = pl.CostEstimate(
        flops=2 * N * Din * HF + 2 * N * HF * 2 * H,
        transcendentals=0,
        bytes_accessed=(4 * (N * Din + Din * HF + HF * 2 * H + N * 2 * H)
                        + feat_isz * N * HF))
    feat_all, scores = pl.pallas_call(
        _project_kernel,
        out_shape=(jax.ShapeDtypeStruct((N, HF), feat_dtype),
                   jax.ShapeDtypeStruct((N, 2 * H), jnp.float32)),
        grid_spec=pltpu.PrefetchScalarGridSpec(
            num_scalar_prefetch=0,
            grid=(N // tile_n,),
            in_specs=[
                pl.BlockSpec((tile_n, Din), lambda i: (i, 0)),       # x tile
                pl.BlockSpec((Din, HF), lambda i: (0, 0)),           # W (all heads)
                pl.BlockSpec((HF, 2 * H), lambda i: (0, 0)),         # attn block-diag
            ],
            out_specs=[
                pl.BlockSpec((tile_n, HF), lambda i: (i, 0)),        # feat (bf16/f32)
                pl.BlockSpec((tile_n, 2 * H), lambda i: (i, 0)),     # [el | er]
            ]),
        compiler_params=pltpu.CompilerParams(
            dimension_semantics=("parallel",)),
        cost_estimate=proj_cost,
    )(feat, fc_weight, attn_cat)

    el_t = scores[:, :H].T                       # (H, N)  tiny one-time transpose
    er = scores[:, H:]                           # (N, H)
    bias2d = bias.reshape(1, HF)

    # ---- Kernel 2: src-chunked online softmax + aggregation ----------------
    n_dst_tiles = N // tile_v
    attn_cost = pl.CostEstimate(
        flops=2 * N * N * H * F + 10 * N * N * H,
        transcendentals=N * N * H,
        bytes_accessed=(N * N                                  # adj int8
                        + feat_isz * n_dst_tiles * N * HF      # feat per dst tile
                        + 4 * (N * HF + n_dst_tiles * N * H + N * H)))
    out = pl.pallas_call(
        functools.partial(_attention_kernel, H, F, logits_dtype),
        out_shape=jax.ShapeDtypeStruct((N, HF), jnp.float32),
        grid_spec=pltpu.PrefetchScalarGridSpec(
            num_scalar_prefetch=0,
            grid=(N // tile_v, N // tile_s),                    # dst tiles x src chunks
            in_specs=[
                pl.BlockSpec((tile_v, H), lambda i, j: (i, 0)),      # er (dst tile)
                pl.BlockSpec((H, tile_s), lambda i, j: (0, j)),      # el^T (src chunk)
                pl.BlockSpec((tile_s, HF), lambda i, j: (j, 0)),     # feat (src chunk)
                pl.BlockSpec((tile_v, tile_s), lambda i, j: (i, j)),  # adj int8 chunk
                pl.BlockSpec((1, HF), lambda i, j: (0, 0)),          # bias
            ],
            out_specs=pl.BlockSpec((tile_v, HF), lambda i, j: (i, 0)),
            scratch_shapes=[
                pltpu.VMEM((tile_v, H), jnp.float32),    # running max
                pltpu.VMEM((tile_v, H), jnp.float32),    # running sum
                pltpu.VMEM((tile_v, HF), jnp.float32),   # accumulator
            ]),
        compiler_params=pltpu.CompilerParams(
            dimension_semantics=("parallel", "arbitrary")),
        cost_estimate=attn_cost,
    )(er, el_t, feat_all, adj_in_i8, bias2d)

    # (N, H*F) -> (N, H, F): pure reshape, no transpose / extra HBM round trip.
    return out.reshape(N, H, F)


def _reference(adj, feat, fc_weight, attn_l, attn_r, bias):
    """Pure-JAX reference of the same forward pass (adj is src-major float)."""
    N, Din = feat.shape
    _, H, F = attn_l.shape
    feat_src = (feat @ fc_weight).reshape(N, H, F)
    el = jnp.sum(feat_src * attn_l, axis=-1)                     # (N, H)
    er = jnp.sum(feat_src * attn_r, axis=-1)                     # (N, H)
    e = el[:, None, :] + er[None, :, :]                          # (src, dst, H)
    e = jnp.where(e >= 0, e, NEG_SLOPE * e)
    mask = adj[:, :, None] > 0
    e = jnp.where(mask, e, -1e30)
    m = jnp.max(e, axis=0, keepdims=True)
    p = jnp.where(mask, jnp.exp(e - m), 0.0)
    a = p / jnp.sum(p, axis=0, keepdims=True)                    # (src, dst, H)
    rst = jnp.einsum("svh,shf->vhf", a, feat_src)
    return rst + bias.reshape(1, H, F)


if __name__ == "__main__":
    # Small, module-consistent shapes; tile_v=tile_s=128 so BOTH grid axes of
    # kernel 2 actually tile (2 dst tiles x 2 src chunks -> online softmax path
    # is exercised).
    N = 256          # number of graph nodes
    IN_FEATS = 32
    OUT_FEATS = 16
    NUM_HEADS = 4

    key = jax.random.PRNGKey(0)
    k_feat, k_adj, k_w, k_al, k_ar, k_b = jax.random.split(key, 6)

    feat = jax.random.normal(k_feat, (N, IN_FEATS), dtype=jnp.float32)

    # Deterministic random graph + self-loops (avoids zero-in-degree nodes,
    # matching the module's allow_zero_in_degree check).
    adj = (jax.random.uniform(k_adj, (N, N)) < 0.10).astype(jnp.float32)
    adj = jnp.maximum(adj, jnp.eye(N, dtype=jnp.float32))
    # Dst-major int8 adjacency, precomputed ONCE outside the forward hot path.
    adj_in_i8 = adj.T.astype(jnp.int8)

    # Deterministic xavier-normal-style init (gain = sqrt(2), as in reset_parameters).
    gain = float(np.sqrt(2.0))
    std_fc = gain * float(np.sqrt(2.0 / (IN_FEATS + NUM_HEADS * OUT_FEATS)))
    std_attn = gain * float(np.sqrt(2.0 / (NUM_HEADS * OUT_FEATS + OUT_FEATS)))
    fc_weight = std_fc * jax.random.normal(
        k_w, (IN_FEATS, NUM_HEADS * OUT_FEATS), dtype=jnp.float32)
    attn_l = std_attn * jax.random.normal(
        k_al, (1, NUM_HEADS, OUT_FEATS), dtype=jnp.float32)
    attn_r = std_attn * jax.random.normal(
        k_ar, (1, NUM_HEADS, OUT_FEATS), dtype=jnp.float32)
    # Module inits bias to 0; use a small nonzero bias to exercise the add path.
    bias = 0.01 * jax.random.normal(
        k_b, (NUM_HEADS * OUT_FEATS,), dtype=jnp.float32)

    ref = _reference(adj, feat, fc_weight, attn_l, attn_r, bias)

    # Default path: bf16 feat / aggregation matmul, f32 logits + online state.
    out = gat_conv_pny_forward(adj_in_i8, feat, fc_weight, attn_l, attn_r, bias,
                               tile_v=128, tile_s=128)
    out = jax.block_until_ready(out)
    np.testing.assert_allclose(np.asarray(out), np.asarray(ref),
                               rtol=3e-2, atol=3e-2)

    # Full-f32 path (reference accuracy; exact softmax denominator).
    out_f32 = gat_conv_pny_forward(adj_in_i8, feat, fc_weight, attn_l, attn_r,
                                   bias, tile_v=128, tile_s=128,
                                   feat_dtype=jnp.float32)
    out_f32 = jax.block_until_ready(out_f32)
    np.testing.assert_allclose(np.asarray(out_f32), np.asarray(ref),
                               rtol=2e-3, atol=2e-3)

    # bf16 logit chain (recommended on v6e/v7x: bf16-native VPU/EUP); loose tol.
    out_bf = gat_conv_pny_forward(adj_in_i8, feat, fc_weight, attn_l, attn_r,
                                  bias, tile_v=128, tile_s=128,
                                  logits_dtype=jnp.bfloat16)
    out_bf = jax.block_until_ready(out_bf)
    np.testing.assert_allclose(np.asarray(out_bf), np.asarray(ref),
                               rtol=1e-1, atol=1e-1)

    print("KERNEL_OK")
</pallas_src>

<mosaic_0001>
module attributes {stable_mosaic.version = 11 : i64} {
  func.func @_project_kernel(%arg0: i32, %arg1: memref<256x32xf32, #tpu.memory_space<vmem>>, %arg2: memref<32x64xf32, #tpu.memory_space<vmem>>, %arg3: memref<64x8xf32, #tpu.memory_space<vmem>>, %arg4: memref<256x64xbf16, #tpu.memory_space<vmem>>, %arg5: memref<256x8xf32, #tpu.memory_space<vmem>>) attributes {dimension_semantics = [#tpu.dimension_semantics<parallel>], iteration_bounds = array<i64: 1>, scalar_prefetch = 0 : i64, scratch_operands = 0 : i64, tpu.core_type = #tpu.core_type<tc>, window_params = [{transform_indices = @transform_0, window_bounds = array<i64: 256, 32>}, {pipeline_mode = #tpu.pipeline_mode<synchronous>, transform_indices = @transform_1, window_bounds = array<i64: 32, 64>}, {pipeline_mode = #tpu.pipeline_mode<synchronous>, transform_indices = @transform_2, window_bounds = array<i64: 64, 8>}, {transform_indices = @transform_3, window_bounds = array<i64: 256, 64>}, {transform_indices = @transform_4, window_bounds = array<i64: 256, 8>}]} {
    %c0 = arith.constant 0 : index
    %c0_0 = arith.constant 0 : index
    %0 = vector.load %arg1[%c0, %c0_0] : memref<256x32xf32, #tpu.memory_space<vmem>>, vector<256x32xf32>
    %c0_1 = arith.constant 0 : index
    %c0_2 = arith.constant 0 : index
    %1 = vector.load %arg2[%c0_1, %c0_2] : memref<32x64xf32, #tpu.memory_space<vmem>>, vector<32x64xf32>
    %cst = arith.constant dense<0.000000e+00> : vector<256x64xf32>
    %2 = tpu.matmul %0, %1, %cst {dimension_numbers = #tpu.dot_dimension_numbers<[1], [0], [0], [1], [0, 0, 1, 1], [], []>} : vector<256x32xf32>, vector<32x64xf32>, vector<256x64xf32> -> vector<256x64xf32>
    %c0_3 = arith.constant 0 : index
    %c0_4 = arith.constant 0 : index
    %3 = vector.load %arg3[%c0_3, %c0_4] : memref<64x8xf32, #tpu.memory_space<vmem>>, vector<64x8xf32>
    %cst_5 = arith.constant dense<0.000000e+00> : vector<256x8xf32>
    %4 = tpu.matmul %2, %3, %cst_5 {dimension_numbers = #tpu.dot_dimension_numbers<[1], [0], [0], [1], [0, 0, 1, 1], [], []>} : vector<256x64xf32>, vector<64x8xf32>, vector<256x8xf32> -> vector<256x8xf32>
    %c0_6 = arith.constant 0 : index
    %c0_7 = arith.constant 0 : index
    %5 = vector.load %arg5[%c0_6, %c0_7] : memref<256x8xf32, #tpu.memory_space<vmem>>, vector<256x8xf32>
    tpu.vector_store %arg5[%c0_6, %c0_7], %4 {strides = array<i32>} : memref<256x8xf32, #tpu.memory_space<vmem>>, vector<256x8xf32>,
    %6 = arith.truncf %2 : vector<256x64xf32> to vector<256x64xbf16>
    %c0_8 = arith.constant 0 : index
    %c0_9 = arith.constant 0 : index
    %7 = vector.load %arg4[%c0_8, %c0_9] : memref<256x64xbf16, #tpu.memory_space<vmem>>, vector<256x64xbf16>
    tpu.vector_store %arg4[%c0_8, %c0_9], %6 {strides = array<i32>} : memref<256x64xbf16, #tpu.memory_space<vmem>>, vector<256x64xbf16>,
    return
  }
  func.func @transform_0(%arg0: i32) -> (i32, i32) {
    %c0_i32 = arith.constant 0 : i32
    %c0_i32_0 = arith.constant 0 : i32
    return %arg0, %c0_i32 : i32, i32
  }
  func.func @transform_1(%arg0: i32) -> (i32, i32) {
    %c0_i32 = arith.constant 0 : i32
    %c0_i32_0 = arith.constant 0 : i32
    %c0_i32_1 = arith.constant 0 : i32
    return %c0_i32, %c0_i32_0 : i32, i32
  }
  func.func @transform_2(%arg0: i32) -> (i32, i32) {
    %c0_i32 = arith.constant 0 : i32
    %c0_i32_0 = arith.constant 0 : i32
    %c0_i32_1 = arith.constant 0 : i32
    return %c0_i32, %c0_i32_0 : i32, i32
  }
  func.func @transform_3(%arg0: i32) -> (i32, i32) {
    %c0_i32 = arith.constant 0 : i32
    %c0_i32_0 = arith.constant 0 : i32
    return %arg0, %c0_i32 : i32, i32
  }
  func.func @transform_4(%arg0: i32) -> (i32, i32) {
    %c0_i32 = arith.constant 0 : i32
    %c0_i32_0 = arith.constant 0 : i32
    return %arg0, %c0_i32 : i32, i32
  }
}

</mosaic_0001>

<bundles_post_ra>
// kernel: tpu_custom_call.1
= control target key start
LH: loop header
LB: loop body
LE: loop exit
PB: predicated region body
PF: predicated region fallthrough
CT: control target
= control target key end

     0   :  { %vm52_vm0 = vcmask 261120   ;;  %vm382_vm1 = vcmask 523264   ;;  %vm865_vm2 = vcmask 519168   ;;  %vm704_vm3 = vcmask 64512   ;;  %s1739_s1 = inlined_call_operand.vmem [shape: f32[32,64], index: 1, kind: input, shape index: {}]   ;;  %s1740_s0 = inlined_call_operand.vmem [shape: f32[256,32], index: 0, kind: input, shape index: {}]   ;;  %s1741_s2 = inlined_call_operand.vmem [shape: f32[64,8], index: 2, kind: input, shape index: {}]   ;;  %s1742_s3 = inlined_call_operand.vmem [shape: bf16[256,64], index: 3, kind: output, shape index: {0}]   ;;  %s1743_s4 = inlined_call_operand.vmem [shape: f32[256,8], index: 4, kind: output, shape index: {1}]  }
   0x1   :  { %v48_v0 = vld [vmem:[%s1739_s1] sm:$0xff]  ;;  %v49_v1 = vld [vmem:[%s1739_s1 + $0x8] sm:$0xff]  ;;  %v50_v2 = vld [vmem:[%s1739_s1 + $0x10] sm:$0xff] }
   0x2   :  { %v1230_v3 = vpack.c.bf16 %v49_v1, %v48_v0  ;;  %v51_v4 = vld [vmem:[%s1739_s1 + $0x18] sm:$0xff]  ;;  %v16_v5 = vld [vmem:[%s1740_s0] sm:$0xff]  ;;  %v17_v7 = vld [vmem:[%s1740_s0 + $0x8] sm:$0xff] }
   0x3   :  { %v1234_v6 = vpack.c.bf16 %v51_v4, %v50_v2  ;;  %1118 = vmatprep.mubr.msk.f32.mxu0 %vm52_vm0, %v16_v5  ;;  %v18_v8 = vld [vmem:[%s1740_s0 + $0x10] sm:$0xff]  ;;  %v19_v9 = vld [vmem:[%s1740_s0 + $0x18] sm:$0xff]  ;;  %v374_v10 = vld [vmem:[%s1741_s2] sm:$0xff] }
   0x4   :  { %1231 = vmatprep.subr.bf16.mxu0 %v1230_v3  ;;  %v375_v11 = vld [vmem:[%s1741_s2 + $0x8] sm:$0xff]  ;;  %v376_v12 = vld [vmem:[%s1741_s2 + $0x10] sm:$0xff]  ;;  %v20_v13 = vld [vmem:[%s1740_s0 + $0x20] sm:$0xff] }
   0x5   :  { %1233 = vmatpush3.bf16.msra.mxu0 %v1230_v3  ;;  %v1238_v14 = vpack.c.bf16 %v375_v11, %v374_v10  ;;  %v377_v15 = vld [vmem:[%s1741_s2 + $0x18] sm:$0xff]  ;;  %v378_v17 = vld [vmem:[%s1741_s2 + $0x20] sm:$0xff]  ;;  %v379_v18 = vld [vmem:[%s1741_s2 + $0x28] sm:$0xff] }
   0x6   :  { %1235 = vmatprep.subr.bf16.mxu0 %v1234_v6  ;;  %v1242_v16 = vpack.c.bf16 %v377_v15, %v376_v12  ;;  %v21_v19 = vld [vmem:[%s1740_s0 + $0x28] sm:$0xff]  ;;  %v22_v20 = vld [vmem:[%s1740_s0 + $0x30] sm:$0xff]  ;;  %v1246_v21 = vpack.c.bf16 %v379_v18, %v378_v17  ;;  %v381_v23 = vld [vmem:[%s1741_s2 + $0x38] sm:$0xff] }
   0x7   :  { %1254 = vmatprep.subr.bf16.mxu1 %v1238_v14  ;;  %v380_v22 = vld [vmem:[%s1741_s2 + $0x30] sm:$0xff]  ;;  %v23_v24 = vld [vmem:[%s1740_s0 + $0x38] sm:$0xff]  ;;  %v24_v25 = vld [vmem:[%s1740_s0 + $0x40] sm:$0xff] }
   0x8   :  { %1258 = vmatpush3.bf16.msra.mxu1 %v1238_v14  ;;  %v1250_v26 = vpack.c.bf16 %v381_v23, %v380_v22  ;;  %v25_v27 = vld [vmem:[%s1740_s0 + $0x48] sm:$0xff]  ;;  %v26_v28 = vld [vmem:[%s1740_s0 + $0x50] sm:$0xff]  ;;  %v27_v29 = vld [vmem:[%s1740_s0 + $0x58] sm:$0xff] }
   0x9   :  { %1237 = vmatpush3.bf16.msra.mxu0 %v1234_v6  ;;  %1255 = vmatprep.subr.bf16.mxu1 %v1242_v16  ;;  %v28_v30 = vld [vmem:[%s1740_s0 + $0x60] sm:$0xff]  ;;  %v29_v31 = vld [vmem:[%s1740_s0 + $0x68] sm:$0xff]  ;;  %v30_v32 = vld [vmem:[%s1740_s0 + $0x70] sm:$0xff] }
   0xa   :  { %1239 = vmatprep.subr.bf16.mxu0 %v1238_v14  ;;  %v31_v33 = vld [vmem:[%s1740_s0 + $0x78] sm:$0xff]  ;;  %v32_v34 = vld [vmem:[%s1740_s0 + $0x80] sm:$0xff]  ;;  %v33_v35 = vld [vmem:[%s1740_s0 + $0x88] sm:$0xff] }
   0xb   :  { %v34_v36 = vld [vmem:[%s1740_s0 + $0x90] sm:$0xff]  ;;  %v35_v37 = vld [vmem:[%s1740_s0 + $0x98] sm:$0xff]  ;;  %v36_v38 = vld [vmem:[%s1740_s0 + $0xa0] sm:$0xff] }
   0xc   :  { %1119 = vmatmul.mubr.msk.f32.vlgmr.msra.gmra.mrb[0].mxu0 %vm52_vm0, %v17_v7  ;;  %1259 = vmatpush3.bf16.msra.mxu1 %v1242_v16  ;;  %v37_v39 = vld [vmem:[%s1740_s0 + $0xa8] sm:$0xff]  ;;  %v38_v40 = vld [vmem:[%s1740_s0 + $0xb0] sm:$0xff]  ;;  %v39_v41 = vld [vmem:[%s1740_s0 + $0xb8] sm:$0xff] }
   0xd   :  { %1121 = vmatprep.mubr.msk.f32.mxu0 %vm52_vm0, %v18_v8  ;;  %1241 = vmatpush3.bf16.msra.mxu0 %v1238_v14  ;;  %v40_v42 = vld [vmem:[%s1740_s0 + $0xc0] sm:$0xff]  ;;  %v41_v43 = vld [vmem:[%s1740_s0 + $0xc8] sm:$0xff]  ;;  %v42_v44 = vld [vmem:[%s1740_s0 + $0xd0] sm:$0xff] }
   0xe   :  { %1243 = vmatprep.subr.bf16.mxu0 %v1242_v16  ;;  %1256 = vmatprep.subr.bf16.mxu1 %v1246_v21  ;;  %v43_v45 = vld [vmem:[%s1740_s0 + $0xd8] sm:$0xff]  ;;  %v44_v46 = vld [vmem:[%s1740_s0 + $0xe0] sm:$0xff]  ;;  %v45_v47 = vld [vmem:[%s1740_s0 + $0xe8] sm:$0xff] }
   0xf   :  { %v46_v48 = vld [vmem:[%s1740_s0 + $0xf0] sm:$0xff]  ;;  %v47_v49 = vld [vmem:[%s1740_s0 + $0xf8] sm:$0xff] }
  0x10   :  { %1122 = vmatmul.mubr.msk.f32.gmra.mrb[2].mxu0 %vm52_vm0, %v19_v9  ;;  %1260 = vmatpush3.bf16.msra.mxu1 %v1246_v21 }
  0x11   :  { %1124 = vmatprep.mubr.msk.f32.mxu0 %vm52_vm0, %v20_v13  ;;  %1245 = vmatpush3.bf16.msra.mxu0 %v1242_v16 }
  0x12   :  { %1247 = vmatprep.subr.bf16.mxu0 %v1246_v21  ;;  %1257 = vmatprep.subr.bf16.mxu1 %v1250_v26 }
  0x14   :  { %1125 = vmatmul.mubr.msk.f32.gmra.mrb[4].mxu0 %vm52_vm0, %v21_v19  ;;  %1261 = vmatpush3.bf16.msra.mxu1 %v1250_v26 }
  0x15   :  { %1127 = vmatprep.mubr.msk.f32.mxu0 %vm52_vm0, %v22_v20  ;;  %1249 = vmatpush3.bf16.msra.mxu0 %v1246_v21 }
  0x16   :  { %1251 = vmatprep.subr.bf16.mxu0 %v1250_v26 }
  0x18   :  { %1128 = vmatmul.mubr.msk.f32.gmra.mrb[6].mxu0 %vm52_vm0, %v23_v24 }
  0x19   :  { %1130 = vmatprep.mubr.msk.f32.mxu0 %vm52_vm0, %v24_v25  ;;  %1253 = vmatpush3.bf16.msra.mxu0 %v1250_v26 }
  0x1c   :  { %1131 = vmatmul.mubr.msk.f32.gmra.mrb[8].mxu0 %vm52_vm0, %v25_v27 }
  0x1d   :  { %1133 = vmatprep.mubr.msk.f32.mxu0 %vm52_vm0, %v26_v28 }
  0x20   :  { %1134 = vmatmul.mubr.msk.f32.gmra.mrb[10].mxu0 %vm52_vm0, %v27_v29 }
  0x21   :  { %1136 = vmatprep.mubr.msk.f32.mxu0 %vm52_vm0, %v28_v30 }
  0x24   :  { %1137 = vmatmul.mubr.msk.f32.gmra.mrb[12].mxu0 %vm52_vm0, %v29_v31 }
  0x25   :  { %1139 = vmatprep.mubr.msk.f32.mxu0 %vm52_vm0, %v30_v32 }
  0x28   :  { %1140 = vmatmul.mubr.msk.f32.gmra.mrb[14].mxu0 %vm52_vm0, %v31_v33 }
  0x29   :  { %1142 = vmatprep.mubr.msk.f32.mxu0 %vm52_vm0, %v32_v34 }
  0x2c   :  { %1143 = vmatmul.mubr.msk.f32.gmra.mrb[16].mxu0 %vm52_vm0, %v33_v35 }
  0x2d   :  { %1145 = vmatprep.mubr.msk.f32.mxu0 %vm52_vm0, %v34_v36 }
  0x30   :  { %1146 = vmatmul.mubr.msk.f32.gmra.mrb[18].mxu0 %vm52_vm0, %v35_v37 }
  0x31   :  { %1148 = vmatprep.mubr.msk.f32.mxu0 %vm52_vm0, %v36_v38 }
  0x34   :  { %1149 = vmatmul.mubr.msk.f32.gmra.mrb[20].mxu0 %vm52_vm0, %v37_v39 }
  0x35   :  { %1151 = vmatprep.mubr.msk.f32.mxu0 %vm52_vm0, %v38_v40 }
  0x38   :  { %1152 = vmatmul.mubr.msk.f32.gmra.mrb[22].mxu0 %vm52_vm0, %v39_v41 }
  0x39   :  { %1154 = vmatprep.mubr.msk.f32.mxu0 %vm52_vm0, %v40_v42 }
  0x3c   :  { %1155 = vmatmul.mubr.msk.f32.gmra.mrb[24].mxu0 %vm52_vm0, %v41_v43 }
  0x3d   :  { %1157 = vmatprep.mubr.msk.f32.mxu0 %vm52_vm0, %v42_v44 }
  0x40   :  { %1158 = vmatmul.mubr.msk.f32.gmra.mrb[26].mxu0 %vm52_vm0, %v43_v45 }
  0x41   :  { %1160 = vmatprep.mubr.msk.f32.mxu0 %vm52_vm0, %v44_v46 }
  0x44   :  { %1161 = vmatmul.mubr.msk.f32.gmra.mrb[28].mxu0 %vm52_vm0, %v45_v47 }
  0x45   :  { %1163 = vmatprep.mubr.msk.f32.mxu0 %vm52_vm0, %v46_v48 }
  0x48   :  { %1164 = vmatmul.mubr.msk.f32.gmra.mrb[30].mxu0 %vm52_vm0, %v47_v49 }
  0xdf   :  { %v1120_v50 = vpop.f32.mrb[0].mxu0 }
  0xe0   :  { %v1003_v51 = vpack.c.bf16 %v1120_v50, %v1120_v50  ;;  %v215_v52 = vpop.f32.mrb[1].mxu0 }
  0xe1   :  { %v1002_v53 = vpack.c.bf16 %v215_v52, %v215_v52  ;;  %1182 = vmatprep.mubr.msk.f32.mxu0 %vm382_vm1, %v215_v52 }
  0xe2   :  { %867 = vst.msk [vmem:[%s1742_s3 + $0x4] sm:$0xf] %vm865_vm2, %v1003_v51  ;;  %1183 = vmatmul.mubr.msk.f32.vlgmr.msra.gmra.mrb[32].mxu0 %vm382_vm1, %v1120_v50 }
  0xe3   :  { %866 = vst.msk [vmem:[%s1742_s3] sm:$0xf] %vm865_vm2, %v1002_v53  ;;  %v1123_v54 = vpop.f32.mrb[2].mxu0 }
  0xe4   :  { %v1005_v55 = vpack.c.bf16 %v1123_v54, %v1123_v54  ;;  %v225_v56 = vpop.f32.mrb[3].mxu0 }
  0xe5   :  { %v1004_v57 = vpack.c.bf16 %v225_v56, %v225_v56  ;;  %1185 = vmatprep.mubr.msk.f32.mxu1 %vm382_vm1, %v225_v56 }
  0xe6   :  { %869 = vst.msk [vmem:[%s1742_s3 + $0xc] sm:$0xf] %vm865_vm2, %v1005_v55  ;;  %1186 = vmatmul.mubr.msk.f32.vlgmr.msra.gmra.mrb[0].mxu1 %vm382_vm1, %v1123_v54 }
  0xe7   :  { %868 = vst.msk [vmem:[%s1742_s3 + $0x8] sm:$0xf] %vm865_vm2, %v1004_v57  ;;  %v1126_v58 = vpop.f32.mrb[4].mxu0 }
  0xe8   :  { %v1007_v59 = vpack.c.bf16 %v1126_v58, %v1126_v58  ;;  %v235_v60 = vpop.f32.mrb[5].mxu0 }
  0xe9   :  { %v1006_v61 = vpack.c.bf16 %v235_v60, %v235_v60  ;;  %1188 = vmatprep.mubr.msk.f32.mxu1 %vm382_vm1, %v235_v60 }
  0xea   :  { %871 = vst.msk [vmem:[%s1742_s3 + $0x14] sm:$0xf] %vm865_vm2, %v1007_v59  ;;  %1189 = vmatmul.mubr.msk.f32.gmra.mrb[2].mxu1 %vm382_vm1, %v1126_v58 }
  0xeb   :  { %870 = vst.msk [vmem:[%s1742_s3 + $0x10] sm:$0xf] %vm865_vm2, %v1006_v61  ;;  %v1129_v62 = vpop.f32.mrb[6].mxu0 }
  0xec   :  { %v1009_v63 = vpack.c.bf16 %v1129_v62, %v1129_v62  ;;  %v245_v0 = vpop.f32.mrb[7].mxu0 }
  0xed   :  { %v1008_v1 = vpack.c.bf16 %v245_v0, %v245_v0  ;;  %1191 = vmatprep.mubr.msk.f32.mxu1 %vm382_vm1, %v245_v0 }
  0xee   :  { %873 = vst.msk [vmem:[%s1742_s3 + $0x1c] sm:$0xf] %vm865_vm2, %v1009_v63  ;;  %1192 = vmatmul.mubr.msk.f32.gmra.mrb[4].mxu1 %vm382_vm1, %v1129_v62 }
  0xef   :  { %872 = vst.msk [vmem:[%s1742_s3 + $0x18] sm:$0xf] %vm865_vm2, %v1008_v1  ;;  %v1132_v2 = vpop.f32.mrb[8].mxu0 }
  0xf0   :  { %v1011_v3 = vpack.c.bf16 %v1132_v2, %v1132_v2  ;;  %v255_v4 = vpop.f32.mrb[9].mxu0 }
  0xf1   :  { %v1010_v5 = vpack.c.bf16 %v255_v4, %v255_v4  ;;  %1194 = vmatprep.mubr.msk.f32.mxu1 %vm382_vm1, %v255_v4 }
  0xf2   :  { %875 = vst.msk [vmem:[%s1742_s3 + $0x24] sm:$0xf] %vm865_vm2, %v1011_v3  ;;  %1195 = vmatmul.mubr.msk.f32.gmra.mrb[6].mxu1 %vm382_vm1, %v1132_v2 }
  0xf3   :  { %874 = vst.msk [vmem:[%s1742_s3 + $0x20] sm:$0xf] %vm865_vm2, %v1010_v5  ;;  %v1135_v6 = vpop.f32.mrb[10].mxu0 }
  0xf4   :  { %v1013_v7 = vpack.c.bf16 %v1135_v6, %v1135_v6  ;;  %v265_v8 = vpop.f32.mrb[11].mxu0 }
  0xf5   :  { %v1012_v9 = vpack.c.bf16 %v265_v8, %v265_v8  ;;  %1197 = vmatprep.mubr.msk.f32.mxu1 %vm382_vm1, %v265_v8 }
  0xf6   :  { %877 = vst.msk [vmem:[%s1742_s3 + $0x2c] sm:$0xf] %vm865_vm2, %v1013_v7  ;;  %1198 = vmatmul.mubr.msk.f32.gmra.mrb[8].mxu1 %vm382_vm1, %v1135_v6 }
  0xf7   :  { %876 = vst.msk [vmem:[%s1742_s3 + $0x28] sm:$0xf] %vm865_vm2, %v1012_v9  ;;  %v1138_v10 = vpop.f32.mrb[12].mxu0 }
  0xf8   :  { %v1015_v11 = vpack.c.bf16 %v1138_v10, %v1138_v10  ;;  %v275_v12 = vpop.f32.mrb[13].mxu0 }
  0xf9   :  { %v1014_v13 = vpack.c.bf16 %v275_v12, %v275_v12  ;;  %1200 = vmatprep.mubr.msk.f32.mxu1 %vm382_vm1, %v275_v12 }
  0xfa   :  { %879 = vst.msk [vmem:[%s1742_s3 + $0x34] sm:$0xf] %vm865_vm2, %v1015_v11  ;;  %1201 = vmatmul.mubr.msk.f32.gmra.mrb[10].mxu1 %vm382_vm1, %v1138_v10 }
  0xfb   :  { %878 = vst.msk [vmem:[%s1742_s3 + $0x30] sm:$0xf] %vm865_vm2, %v1014_v13  ;;  %v1141_v14 = vpop.f32.mrb[14].mxu0 }
  0xfc   :  { %v1017_v15 = vpack.c.bf16 %v1141_v14, %v1141_v14  ;;  %v285_v16 = vpop.f32.mrb[15].mxu0 }
  0xfd   :  { %v1016_v17 = vpack.c.bf16 %v285_v16, %v285_v16  ;;  %1203 = vmatprep.mubr.msk.f32.mxu1 %vm382_vm1, %v285_v16 }
  0xfe   :  { %881 = vst.msk [vmem:[%s1742_s3 + $0x3c] sm:$0xf] %vm865_vm2, %v1017_v15  ;;  %1204 = vmatmul.mubr.msk.f32.gmra.mrb[12].mxu1 %vm382_vm1, %v1141_v14 }
  0xff   :  { %880 = vst.msk [vmem:[%s1742_s3 + $0x38] sm:$0xf] %vm865_vm2, %v1016_v17  ;;  %v1144_v18 = vpop.f32.mrb[16].mxu0 }
 0x100   :  { %v1019_v19 = vpack.c.bf16 %v1144_v18, %v1144_v18  ;;  %v295_v20 = vpop.f32.mrb[17].mxu0 }
 0x101   :  { %v1018_v21 = vpack.c.bf16 %v295_v20, %v295_v20  ;;  %1206 = vmatprep.mubr.msk.f32.mxu1 %vm382_vm1, %v295_v20 }
 0x102   :  { %883 = vst.msk [vmem:[%s1742_s3 + $0x44] sm:$0xf] %vm865_vm2, %v1019_v19  ;;  %1207 = vmatmul.mubr.msk.f32.gmra.mrb[14].mxu1 %vm382_vm1, %v1144_v18 }
 0x103   :  { %882 = vst.msk [vmem:[%s1742_s3 + $0x40] sm:$0xf] %vm865_vm2, %v1018_v21  ;;  %v1147_v22 = vpop.f32.mrb[18].mxu0 }
 0x104   :  { %v1021_v23 = vpack.c.bf16 %v1147_v22, %v1147_v22  ;;  %v305_v24 = vpop.f32.mrb[19].mxu0 }
 0x105   :  { %v1020_v25 = vpack.c.bf16 %v305_v24, %v305_v24  ;;  %1209 = vmatprep.mubr.msk.f32.mxu1 %vm382_vm1, %v305_v24 }
 0x106   :  { %885 = vst.msk [vmem:[%s1742_s3 + $0x4c] sm:$0xf] %vm865_vm2, %v1021_v23  ;;  %1210 = vmatmul.mubr.msk.f32.gmra.mrb[16].mxu1 %vm382_vm1, %v1147_v22 }
 0x107   :  { %884 = vst.msk [vmem:[%s1742_s3 + $0x48] sm:$0xf] %vm865_vm2, %v1020_v25  ;;  %v1150_v26 = vpop.f32.mrb[20].mxu0 }
 0x108   :  { %v1023_v27 = vpack.c.bf16 %v1150_v26, %v1150_v26  ;;  %v315_v28 = vpop.f32.mrb[21].mxu0 }
 0x109   :  { %v1022_v29 = vpack.c.bf16 %v315_v28, %v315_v28  ;;  %1212 = vmatprep.mubr.msk.f32.mxu1 %vm382_vm1, %v315_v28 }
 0x10a   :  { %887 = vst.msk [vmem:[%s1742_s3 + $0x54] sm:$0xf] %vm865_vm2, %v1023_v27  ;;  %1213 = vmatmul.mubr.msk.f32.gmra.mrb[18].mxu1 %vm382_vm1, %v1150_v26 }
 0x10b   :  { %886 = vst.msk [vmem:[%s1742_s3 + $0x50] sm:$0xf] %vm865_vm2, %v1022_v29  ;;  %v1153_v30 = vpop.f32.mrb[22].mxu0 }
 0x10c   :  { %v1025_v31 = vpack.c.bf16 %v1153_v30, %v1153_v30  ;;  %v325_v32 = vpop.f32.mrb[23].mxu0 }
 0x10d   :  { %v1024_v33 = vpack.c.bf16 %v325_v32, %v325_v32  ;;  %1215 = vmatprep.mubr.msk.f32.mxu1 %vm382_vm1, %v325_v32 }
 0x10e   :  { %889 = vst.msk [vmem:[%s1742_s3 + $0x5c] sm:$0xf] %vm865_vm2, %v1025_v31  ;;  %1216 = vmatmul.mubr.msk.f32.gmra.mrb[20].mxu1 %vm382_vm1, %v1153_v30 }
 0x10f   :  { %888 = vst.msk [vmem:[%s1742_s3 + $0x58] sm:$0xf] %vm865_vm2, %v1024_v33  ;;  %v1156_v34 = vpop.f32.mrb[24].mxu0 }
 0x110   :  { %v1027_v35 = vpack.c.bf16 %v1156_v34, %v1156_v34  ;;  %v335_v36 = vpop.f32.mrb[25].mxu0 }
 0x111   :  { %v1026_v37 = vpack.c.bf16 %v335_v36, %v335_v36  ;;  %1218 = vmatprep.mubr.msk.f32.mxu1 %vm382_vm1, %v335_v36 }
 0x112   :  { %891 = vst.msk [vmem:[%s1742_s3 + $0x64] sm:$0xf] %vm865_vm2, %v1027_v35  ;;  %1219 = vmatmul.mubr.msk.f32.gmra.mrb[22].mxu1 %vm382_vm1, %v1156_v34 }
 0x113   :  { %890 = vst.msk [vmem:[%s1742_s3 + $0x60] sm:$0xf] %vm865_vm2, %v1026_v37  ;;  %v1159_v38 = vpop.f32.mrb[26].mxu0 }
 0x114   :  { %v1029_v39 = vpack.c.bf16 %v1159_v38, %v1159_v38  ;;  %v345_v40 = vpop.f32.mrb[27].mxu0 }
 0x115   :  { %v1028_v41 = vpack.c.bf16 %v345_v40, %v345_v40  ;;  %1221 = vmatprep.mubr.msk.f32.mxu1 %vm382_vm1, %v345_v40 }
 0x116   :  { %893 = vst.msk [vmem:[%s1742_s3 + $0x6c] sm:$0xf] %vm865_vm2, %v1029_v39  ;;  %1222 = vmatmul.mubr.msk.f32.gmra.mrb[24].mxu1 %vm382_vm1, %v1159_v38 }
 0x117   :  { %892 = vst.msk [vmem:[%s1742_s3 + $0x68] sm:$0xf] %vm865_vm2, %v1028_v41  ;;  %v1162_v42 = vpop.f32.mrb[28].mxu0 }
 0x118   :  { %v1031_v43 = vpack.c.bf16 %v1162_v42, %v1162_v42  ;;  %v355_v44 = vpop.f32.mrb[29].mxu0 }
 0x119   :  { %v1030_v45 = vpack.c.bf16 %v355_v44, %v355_v44  ;;  %1224 = vmatprep.mubr.msk.f32.mxu1 %vm382_vm1, %v355_v44 }
 0x11a   :  { %895 = vst.msk [vmem:[%s1742_s3 + $0x74] sm:$0xf] %vm865_vm2, %v1031_v43  ;;  %1225 = vmatmul.mubr.msk.f32.gmra.mrb[26].mxu1 %vm382_vm1, %v1162_v42 }
 0x11b   :  { %894 = vst.msk [vmem:[%s1742_s3 + $0x70] sm:$0xf] %vm865_vm2, %v1030_v45  ;;  %v1165_v46 = vpop.f32.mrb[30].mxu0 }
 0x11c   :  { %v1033_v47 = vpack.c.bf16 %v1165_v46, %v1165_v46  ;;  %v365_v48 = vpop.f32.mrb[31].mxu0 }
 0x11d   :  { %v1032_v49 = vpack.c.bf16 %v365_v48, %v365_v48  ;;  %1227 = vmatprep.mubr.msk.f32.mxu1 %vm382_vm1, %v365_v48 }
 0x11e   :  { %897 = vst.msk [vmem:[%s1742_s3 + $0x7c] sm:$0xf] %vm865_vm2, %v1033_v47  ;;  %1228 = vmatmul.mubr.msk.f32.gmra.mrb[28].mxu1 %vm382_vm1, %v1165_v46 }
 0x11f   :  { %896 = vst.msk [vmem:[%s1742_s3 + $0x78] sm:$0xf] %vm865_vm2, %v1032_v49 }
 0x1b5   :  { %v1184_v50 = vpop.f32.mrb[32].mxu0 }
 0x1b6   :  { %706 = vst.msk [vmem:[%s1743_s4 + $0x8] sm:$0xff] %vm704_vm3, %v1184_v50  ;;  %v545_v51 = vpop.f32.mrb[33].mxu0 }
 0x1b7   :  { %705 = vst.msk [vmem:[%s1743_s4] sm:$0xff] %vm704_vm3, %v545_v51 }
 0x1b9   :  { %v1187_v52 = vpop.f32.mrb[0].mxu1 }
 0x1ba   :  { %708 = vst.msk [vmem:[%s1743_s4 + $0x18] sm:$0xff] %vm704_vm3, %v1187_v52  ;;  %v555_v53 = vpop.f32.mrb[1].mxu1 }
 0x1bb   :  { %707 = vst.msk [vmem:[%s1743_s4 + $0x10] sm:$0xff] %vm704_vm3, %v555_v53 }
 0x1bd   :  { %v1190_v54 = vpop.f32.mrb[2].mxu1 }
 0x1be   :  { %710 = vst.msk [vmem:[%s1743_s4 + $0x28] sm:$0xff] %vm704_vm3, %v1190_v54  ;;  %v565_v55 = vpop.f32.mrb[3].mxu1 }
 0x1bf   :  { %709 = vst.msk [vmem:[%s1743_s4 + $0x20] sm:$0xff] %vm704_vm3, %v565_v55 }
 0x1c1   :  { %v1193_v56 = vpop.f32.mrb[4].mxu1 }
 0x1c2   :  { %712 = vst.msk [vmem:[%s1743_s4 + $0x38] sm:$0xff] %vm704_vm3, %v1193_v56  ;;  %v575_v57 = vpop.f32.mrb[5].mxu1 }
 0x1c3   :  { %711 = vst.msk [vmem:[%s1743_s4 + $0x30] sm:$0xff] %vm704_vm3, %v575_v57 }
 0x1c5   :  { %v1196_v58 = vpop.f32.mrb[6].mxu1 }
 0x1c6   :  { %714 = vst.msk [vmem:[%s1743_s4 + $0x48] sm:$0xff] %vm704_vm3, %v1196_v58  ;;  %v585_v59 = vpop.f32.mrb[7].mxu1 }
 0x1c7   :  { %713 = vst.msk [vmem:[%s1743_s4 + $0x40] sm:$0xff] %vm704_vm3, %v585_v59 }
 0x1c9   :  { %v1199_v60 = vpop.f32.mrb[8].mxu1 }
 0x1ca   :  { %716 = vst.msk [vmem:[%s1743_s4 + $0x58] sm:$0xff] %vm704_vm3, %v1199_v60  ;;  %v595_v61 = vpop.f32.mrb[9].mxu1 }
 0x1cb   :  { %715 = vst.msk [vmem:[%s1743_s4 + $0x50] sm:$0xff] %vm704_vm3, %v595_v61 }
 0x1cd   :  { %v1202_v62 = vpop.f32.mrb[10].mxu1 }
 0x1ce   :  { %718 = vst.msk [vmem:[%s1743_s4 + $0x68] sm:$0xff] %vm704_vm3, %v1202_v62  ;;  %v605_v63 = vpop.f32.mrb[11].mxu1 }
 0x1cf   :  { %717 = vst.msk [vmem:[%s1743_s4 + $0x60] sm:$0xff] %vm704_vm3, %v605_v63 }
 0x1d1   :  { %v1205_v0 = vpop.f32.mrb[12].mxu1 }
 0x1d2   :  { %720 = vst.msk [vmem:[%s1743_s4 + $0x78] sm:$0xff] %vm704_vm3, %v1205_v0  ;;  %v615_v1 = vpop.f32.mrb[13].mxu1 }
 0x1d3   :  { %719 = vst.msk [vmem:[%s1743_s4 + $0x70] sm:$0xff] %vm704_vm3, %v615_v1 }
 0x1d5   :  { %v1208_v2 = vpop.f32.mrb[14].mxu1 }
 0x1d6   :  { %722 = vst.msk [vmem:[%s1743_s4 + $0x88] sm:$0xff] %vm704_vm3, %v1208_v2  ;;  %v625_v3 = vpop.f32.mrb[15].mxu1 }
 0x1d7   :  { %721 = vst.msk [vmem:[%s1743_s4 + $0x80] sm:$0xff] %vm704_vm3, %v625_v3 }
 0x1d9   :  { %v1211_v4 = vpop.f32.mrb[16].mxu1 }
 0x1da   :  { %724 = vst.msk [vmem:[%s1743_s4 + $0x98] sm:$0xff] %vm704_vm3, %v1211_v4  ;;  %v635_v5 = vpop.f32.mrb[17].mxu1 }
 0x1db   :  { %723 = vst.msk [vmem:[%s1743_s4 + $0x90] sm:$0xff] %vm704_vm3, %v635_v5 }
 0x1dd   :  { %v1214_v6 = vpop.f32.mrb[18].mxu1 }
 0x1de   :  { %726 = vst.msk [vmem:[%s1743_s4 + $0xa8] sm:$0xff] %vm704_vm3, %v1214_v6  ;;  %v645_v7 = vpop.f32.mrb[19].mxu1 }
 0x1df   :  { %725 = vst.msk [vmem:[%s1743_s4 + $0xa0] sm:$0xff] %vm704_vm3, %v645_v7 }
 0x1e1   :  { %v1217_v8 = vpop.f32.mrb[20].mxu1 }
 0x1e2   :  { %728 = vst.msk [vmem:[%s1743_s4 + $0xb8] sm:$0xff] %vm704_vm3, %v1217_v8  ;;  %v655_v9 = vpop.f32.mrb[21].mxu1 }
 0x1e3   :  { %727 = vst.msk [vmem:[%s1743_s4 + $0xb0] sm:$0xff] %vm704_vm3, %v655_v9 }
 0x1e5   :  { %v1220_v10 = vpop.f32.mrb[22].mxu1 }
 0x1e6   :  { %730 = vst.msk [vmem:[%s1743_s4 + $0xc8] sm:$0xff] %vm704_vm3, %v1220_v10  ;;  %v665_v11 = vpop.f32.mrb[23].mxu1 }
 0x1e7   :  { %729 = vst.msk [vmem:[%s1743_s4 + $0xc0] sm:$0xff] %vm704_vm3, %v665_v11 }
 0x1e9   :  { %v1223_v12 = vpop.f32.mrb[24].mxu1 }
 0x1ea   :  { %732 = vst.msk [vmem:[%s1743_s4 + $0xd8] sm:$0xff] %vm704_vm3, %v1223_v12  ;;  %v675_v13 = vpop.f32.mrb[25].mxu1 }
 0x1eb   :  { %731 = vst.msk [vmem:[%s1743_s4 + $0xd0] sm:$0xff] %vm704_vm3, %v675_v13 }
 0x1ed   :  { %v1226_v14 = vpop.f32.mrb[26].mxu1 }
 0x1ee   :  { %734 = vst.msk [vmem:[%s1743_s4 + $0xe8] sm:$0xff] %vm704_vm3, %v1226_v14  ;;  %v685_v15 = vpop.f32.mrb[27].mxu1 }
 0x1ef   :  { %733 = vst.msk [vmem:[%s1743_s4 + $0xe0] sm:$0xff] %vm704_vm3, %v685_v15 }
 0x1f1   :  { %v1229_v16 = vpop.f32.mrb[28].mxu1 }
 0x1f2   :  { %736 = vst.msk [vmem:[%s1743_s4 + $0xf8] sm:$0xff] %vm704_vm3, %v1229_v16  ;;  %v695_v17 = vpop.f32.mrb[29].mxu1 }
 0x1f3   :  { %735 = vst.msk [vmem:[%s1743_s4 + $0xf0] sm:$0xff] %vm704_vm3, %v695_v17 }

</bundles_post_ra>
